<compile_context>
chip_gen: v6e
topology: v6e:2x2x1
jax: 0.10.0
libtpu: 0.0.40
codegen_flags: <defaults>
</compile_context>

<pallas_src>
import jax
import jax.numpy as jnp
from jax.experimental import pallas as pl
from jax.experimental.pallas import tpu as pltpu

# Fixed encoder/decoder dims from the module's __init__.
D1, D2, D3 = 256, 64, 32
_LANE = 128
_SUBLANE = 8


def _round_up(x, m):
    return ((x + m - 1) // m) * m


def _cdiv(a, b):
    return -(-a // b)


def _tpu_generation():
    """Best-effort TPU generation (4/5/6/7); 0 if unknown."""
    try:
        kind = jax.devices()[0].device_kind.lower()
    except Exception:
        return 0
    for gen in (7, 6, 5, 4):
        if str(gen) in kind:
            return gen
    return 0


def _compute_dtype_for(gen):
    # v6e / v7x have a native bf16 VPU datapath; v5e (and unknown) stay f32.
    return jnp.bfloat16 if gen >= 6 else jnp.float32


def _vmem_capacity_bytes(gen):
    try:
        return int(pltpu.get_tpu_info().vmem_capacity_bytes)
    except Exception:
        return (64 << 20) if gen >= 7 else (128 << 20)


def _make_kernel(compute_dtype, dot_dtype):
    """6 chained Linear(+ReLU) layers, fully resident in VMEM."""

    def kernel(x_ref,
               w1_ref, b1_ref, w2_ref, b2_ref, w3_ref, b3_ref,
               w4_ref, b4_ref, w5_ref, b5_ref, w6_ref, b6_ref,
               o_ref):
        # TODO(synk): nonzero training-time dropout would need pltpu.prng_seed /
        # pltpu.prng_random_bits; the module default p=0.0 is the identity here.
        hidden = ((w1_ref, b1_ref), (w2_ref, b2_ref), (w3_ref, b3_ref),
                  (w4_ref, b4_ref), (w5_ref, b5_ref))
        # x is streamed in the MXU dot dtype (bf16) -> no in-kernel cast pass.
        h = x_ref[...]
        for w_ref, b_ref in hidden:
            acc = jnp.dot(h, w_ref[...], preferred_element_type=jnp.float32)
            y = acc.astype(compute_dtype) + b_ref[...]      # bf16 VPU on v6e/v7x
            y = jnp.maximum(y, 0.0)
            h = y.astype(dot_dtype)                         # no-op when already bf16
        # Final layer: bias-add in f32 on the f32 accumulator -> f32 output.
        acc = jnp.dot(h, w6_ref[...], preferred_element_type=jnp.float32)
        o_ref[...] = (acc + b6_ref[...]).astype(o_ref.dtype)

    return kernel


def encoder_sc(x, params, *, tm=None, dot_dtype=jnp.bfloat16, compute_dtype=None):
    """x: (N, dim_input) f32.  params: dict of weights (in,out) and biases (out,)."""
    N, D_in = x.shape
    gen = _tpu_generation()
    if compute_dtype is None:
        compute_dtype = _compute_dtype_for(gen)

    # Lane-dense I/O: pad the feature dim to a multiple of 128.
    D_pad = _round_up(max(D_in, _LANE), _LANE)

    # ---- Row tile selection ------------------------------------------------
    # Target ~1024 rows/step (amortizes ~0.35us/step, ~512 KiB DMAs), balanced
    # so batch-padding waste stays < tm/2, >=2 steps on v7x (2 TCs/chip), and
    # clamped so double-buffered x/out blocks stay comfortably inside VMEM.
    if tm is None:
        target_rows = 1024
        n_steps = max(1, _cdiv(N, target_rows))
        if gen >= 7:
            n_steps = max(n_steps, 2)
        tm = _round_up(_cdiv(N, n_steps), _SUBLANE)
        per_row = D_pad * (2 * 2 + 2 * 4) + (2 * D1 + 2 * D2 + D3) * 4
        max_tm = max(_SUBLANE, ((24 << 20) // per_row) // _SUBLANE * _SUBLANE)
        tm = min(tm, max_tm)
    tm = max(_SUBLANE, _round_up(tm, _SUBLANE))
    N_pad = _round_up(N, tm)

    # ---- Pad + cast activations and first/last-layer params -----------------
    # Exact: padded x lanes are zero and hit zero weight rows; padded output
    # lanes / rows are sliced off below.  x streams as bf16 (the first dot
    # truncates to bf16 anyway) -> half the input HBM bytes.
    x_p = x.astype(dot_dtype)
    if (N_pad, D_pad) != (N, D_in):
        x_p = jnp.pad(x_p, ((0, N_pad - N), (0, D_pad - D_in)))

    def pad_w(wm, rows, cols):
        return jnp.pad(wm, ((0, rows - wm.shape[0]), (0, cols - wm.shape[1])))

    w = {i: params[f"w{i}"] for i in range(1, 7)}
    b = {i: params[f"b{i}"] for i in range(1, 7)}
    w[1] = pad_w(w[1], D_pad, D1)
    w[6] = pad_w(w[6], D1, D_pad)
    b[6] = jnp.pad(b[6], (0, D_pad - D_in))

    flat_params = []
    for i in range(1, 7):
        flat_params.append(w[i].astype(dot_dtype))                      # bf16 weights
        bias_dtype = jnp.float32 if i == 6 else compute_dtype
        flat_params.append(b[i].reshape(1, -1).astype(bias_dtype))

    # Weights/biases are grid-invariant (same block every step) -> resident in
    # VMEM across the whole grid, no re-fetch.
    param_specs = [pl.BlockSpec(p.shape, lambda i: (0, 0)) for p in flat_params]

    grid = (N_pad // tm,)

    # Advisory cost hint (the two D_pad<->256 layers dominate).
    weight_bytes = sum(int(p.size) * p.dtype.itemsize for p in flat_params)
    flops = 2 * N_pad * 2 * (D_pad * D1 + D1 * D2 + D2 * D3)
    bytes_accessed = N_pad * D_pad * (x_p.dtype.itemsize + 4) + weight_bytes
    cost = pl.CostEstimate(flops=int(flops), transcendentals=0,
                           bytes_accessed=int(bytes_accessed))

    # Generation-aware scoped-VMEM handling: raise the limit only past the
    # per-chip default (16 MiB v5e / 32 MiB v6e+), cap at 48 MiB on v7x.
    vmem_est = (2 * tm * D_pad * x_p.dtype.itemsize    # x blocks, double-buffered
                + 2 * tm * D_pad * 4                   # out blocks, double-buffered
                + 2 * weight_bytes                     # params (conservative x2)
                + tm * (2 * D1 + 2 * D2 + D3) * 4)     # live intermediates
    default_scoped = (16 << 20) if gen == 5 else (32 << 20)
    phys = _vmem_capacity_bytes(gen)
    cap = min((48 << 20) if gen >= 7 else (96 << 20), (phys * 3) // 4)
    vmem_limit = None
    if vmem_est > default_scoped:
        vmem_limit = max(default_scoped, min(int(vmem_est) + (4 << 20), cap))

    kernel = _make_kernel(compute_dtype, dot_dtype)

    out = pl.pallas_call(
        kernel,
        # Output dtype pinned to f32 regardless of the bf16 input stream.
        out_shape=jax.ShapeDtypeStruct((N_pad, D_pad), jnp.float32),
        grid_spec=pltpu.PrefetchScalarGridSpec(
            num_scalar_prefetch=0,
            grid=grid,
            in_specs=[pl.BlockSpec((tm, D_pad), lambda i: (i, 0))] + param_specs,
            out_specs=pl.BlockSpec((tm, D_pad), lambda i: (i, 0)),
        ),
        compiler_params=pltpu.CompilerParams(
            dimension_semantics=("parallel",),
            vmem_limit_bytes=vmem_limit),
        cost_estimate=cost,
    )(x_p, *flat_params)

    return out[:N, :D_in]


def init_params(key, dim_input):
    """Deterministic synthetic init (uniform like torch.nn.Linear default)."""
    dims = [dim_input, D1, D2, D3, D2, D1, dim_input]
    params = {}
    for i in range(6):
        fan_in, fan_out = dims[i], dims[i + 1]
        key, kw, kb = jax.random.split(key, 3)
        bound = 1.0 / jnp.sqrt(fan_in)
        params[f"w{i+1}"] = jax.random.uniform(
            kw, (fan_in, fan_out), jnp.float32, -bound, bound)
        params[f"b{i+1}"] = jax.random.uniform(
            kb, (fan_out,), jnp.float32, -bound, bound)
    return params


def encoder_sc_ref(x, params, *, dot_dtype=jnp.float32, compute_dtype=jnp.float32):
    """Pure-JAX reference.  dot_dtype / compute_dtype mirror the kernel numerics."""
    h = x.astype(dot_dtype)
    for i in range(1, 6):
        acc = jnp.dot(h.astype(dot_dtype), params[f"w{i}"].astype(dot_dtype),
                      preferred_element_type=jnp.float32)
        y = acc.astype(compute_dtype) + params[f"b{i}"].astype(compute_dtype)
        h = jnp.maximum(y, 0.0)
    acc = jnp.dot(h.astype(dot_dtype), params["w6"].astype(dot_dtype),
                  preferred_element_type=jnp.float32)
    return (acc + params["b6"]).astype(jnp.float32)


if __name__ == "__main__":
    key = jax.random.PRNGKey(0)
    k_x, k_p = jax.random.split(key)

    # Deliberately ragged shapes to exercise the row- and lane-padding paths.
    N, dim_input = 50, 96
    x = jax.random.normal(k_x, (N, dim_input), jnp.float32)
    params = init_params(k_p, dim_input)

    out = jax.block_until_ready(encoder_sc(x, params))
    assert out.shape == (N, dim_input)
    assert out.dtype == jnp.float32

    # Check vs a reference using the same dot/compute dtypes as the kernel.
    gen = _tpu_generation()
    ref_matched = encoder_sc_ref(x, params, dot_dtype=jnp.bfloat16,
                                 compute_dtype=_compute_dtype_for(gen))
    assert jnp.allclose(out, ref_matched, atol=2e-2, rtol=2e-2), \
        "dtype-matched reference mismatch"

    # Drift sanity check vs the full-f32 (PyTorch-equivalent) reference.
    ref_f32 = encoder_sc_ref(x, params)
    rel = jnp.linalg.norm(out - ref_f32) / jnp.linalg.norm(ref_f32)
    assert rel < 5e-2, f"f32 drift too large: {rel}"

    print("KERNEL_OK")
</pallas_src>

<mosaic_0001>
module attributes {stable_mosaic.version = 11 : i64} {
  func.func @kernel(%arg0: i32, %arg1: memref<56x128xbf16, #tpu.memory_space<vmem>>, %arg2: memref<128x256xbf16, #tpu.memory_space<vmem>>, %arg3: memref<1x256xf32, #tpu.memory_space<vmem>>, %arg4: memref<256x64xbf16, #tpu.memory_space<vmem>>, %arg5: memref<1x64xf32, #tpu.memory_space<vmem>>, %arg6: memref<64x32xbf16, #tpu.memory_space<vmem>>, %arg7: memref<1x32xf32, #tpu.memory_space<vmem>>, %arg8: memref<32x64xbf16, #tpu.memory_space<vmem>>, %arg9: memref<1x64xf32, #tpu.memory_space<vmem>>, %arg10: memref<64x256xbf16, #tpu.memory_space<vmem>>, %arg11: memref<1x256xf32, #tpu.memory_space<vmem>>, %arg12: memref<256x128xbf16, #tpu.memory_space<vmem>>, %arg13: memref<1x128xf32, #tpu.memory_space<vmem>>, %arg14: memref<56x128xf32, #tpu.memory_space<vmem>>) attributes {dimension_semantics = [#tpu.dimension_semantics<parallel>], iteration_bounds = array<i64: 1>, scalar_prefetch = 0 : i64, scratch_operands = 0 : i64, tpu.core_type = #tpu.core_type<tc>, window_params = [{transform_indices = @transform_0, window_bounds = array<i64: 56, 128>}, {pipeline_mode = #tpu.pipeline_mode<synchronous>, transform_indices = @transform_1, window_bounds = array<i64: 128, 256>}, {pipeline_mode = #tpu.pipeline_mode<synchronous>, transform_indices = @transform_2, window_bounds = array<i64: 1, 256>}, {pipeline_mode = #tpu.pipeline_mode<synchronous>, transform_indices = @transform_3, window_bounds = array<i64: 256, 64>}, {pipeline_mode = #tpu.pipeline_mode<synchronous>, transform_indices = @transform_4, window_bounds = array<i64: 1, 64>}, {pipeline_mode = #tpu.pipeline_mode<synchronous>, transform_indices = @transform_5, window_bounds = array<i64: 64, 32>}, {pipeline_mode = #tpu.pipeline_mode<synchronous>, transform_indices = @transform_6, window_bounds = array<i64: 1, 32>}, {pipeline_mode = #tpu.pipeline_mode<synchronous>, transform_indices = @transform_7, window_bounds = array<i64: 32, 64>}, {pipeline_mode = #tpu.pipeline_mode<synchronous>, transform_indices = @transform_8, window_bounds = array<i64: 1, 64>}, {pipeline_mode = #tpu.pipeline_mode<synchronous>, transform_indices = @transform_9, window_bounds = array<i64: 64, 256>}, {pipeline_mode = #tpu.pipeline_mode<synchronous>, transform_indices = @transform_10, window_bounds = array<i64: 1, 256>}, {pipeline_mode = #tpu.pipeline_mode<synchronous>, transform_indices = @transform_11, window_bounds = array<i64: 256, 128>}, {pipeline_mode = #tpu.pipeline_mode<synchronous>, transform_indices = @transform_12, window_bounds = array<i64: 1, 128>}, {transform_indices = @transform_13, window_bounds = array<i64: 56, 128>}]} {
    %c0 = arith.constant 0 : index
    %c0_0 = arith.constant 0 : index
    %0 = vector.load %arg1[%c0, %c0_0] : memref<56x128xbf16, #tpu.memory_space<vmem>>, vector<56x128xbf16>
    %c0_1 = arith.constant 0 : index
    %c0_2 = arith.constant 0 : index
    %1 = vector.load %arg2[%c0_1, %c0_2] : memref<128x256xbf16, #tpu.memory_space<vmem>>, vector<128x256xbf16>
    %cst = arith.constant dense<0.000000e+00> : vector<56x256xf32>
    %2 = tpu.matmul %0, %1, %cst {dimension_numbers = #tpu.dot_dimension_numbers<[1], [0], [0], [1], [0, 0, 1, 1], [], []>} : vector<56x128xbf16>, vector<128x256xbf16>, vector<56x256xf32> -> vector<56x256xf32>
    %c0_3 = arith.constant 0 : index
    %c0_4 = arith.constant 0 : index
    %3 = vector.load %arg3[%c0_3, %c0_4] : memref<1x256xf32, #tpu.memory_space<vmem>>, vector<1x256xf32>
    %4 = vector.broadcast %3 : vector<1x256xf32> to vector<56x256xf32>
    %5 = arith.addf %2, %4 : vector<56x256xf32>
    %cst_5 = arith.constant 0.000000e+00 : f32
    %6 = vector.broadcast %cst_5 : f32 to vector<56x256xf32>
    %7 = arith.maximumf %5, %6 : vector<56x256xf32>
    %8 = arith.truncf %7 : vector<56x256xf32> to vector<56x256xbf16>
    %c0_6 = arith.constant 0 : index
    %c0_7 = arith.constant 0 : index
    %9 = vector.load %arg4[%c0_6, %c0_7] : memref<256x64xbf16, #tpu.memory_space<vmem>>, vector<256x64xbf16>
    %cst_8 = arith.constant dense<0.000000e+00> : vector<56x64xf32>
    %10 = tpu.matmul %8, %9, %cst_8 {dimension_numbers = #tpu.dot_dimension_numbers<[1], [0], [0], [1], [0, 0, 1, 1], [], []>} : vector<56x256xbf16>, vector<256x64xbf16>, vector<56x64xf32> -> vector<56x64xf32>
    %c0_9 = arith.constant 0 : index
    %c0_10 = arith.constant 0 : index
    %11 = vector.load %arg5[%c0_9, %c0_10] : memref<1x64xf32, #tpu.memory_space<vmem>>, vector<1x64xf32>
    %12 = vector.broadcast %11 : vector<1x64xf32> to vector<56x64xf32>
    %13 = arith.addf %10, %12 : vector<56x64xf32>
    %cst_11 = arith.constant 0.000000e+00 : f32
    %14 = vector.broadcast %cst_11 : f32 to vector<56x64xf32>
    %15 = arith.maximumf %13, %14 : vector<56x64xf32>
    %16 = arith.truncf %15 : vector<56x64xf32> to vector<56x64xbf16>
    %c0_12 = arith.constant 0 : index
    %c0_13 = arith.constant 0 : index
    %17 = vector.load %arg6[%c0_12, %c0_13] : memref<64x32xbf16, #tpu.memory_space<vmem>>, vector<64x32xbf16>
    %cst_14 = arith.constant dense<0.000000e+00> : vector<56x32xf32>
    %18 = tpu.matmul %16, %17, %cst_14 {dimension_numbers = #tpu.dot_dimension_numbers<[1], [0], [0], [1], [0, 0, 1, 1], [], []>} : vector<56x64xbf16>, vector<64x32xbf16>, vector<56x32xf32> -> vector<56x32xf32>
    %c0_15 = arith.constant 0 : index
    %c0_16 = arith.constant 0 : index
    %19 = vector.load %arg7[%c0_15, %c0_16] : memref<1x32xf32, #tpu.memory_space<vmem>>, vector<1x32xf32>
    %20 = vector.broadcast %19 : vector<1x32xf32> to vector<56x32xf32>
    %21 = arith.addf %18, %20 : vector<56x32xf32>
    %cst_17 = arith.constant 0.000000e+00 : f32
    %22 = vector.broadcast %cst_17 : f32 to vector<56x32xf32>
    %23 = arith.maximumf %21, %22 : vector<56x32xf32>
    %24 = arith.truncf %23 : vector<56x32xf32> to vector<56x32xbf16>
    %c0_18 = arith.constant 0 : index
    %c0_19 = arith.constant 0 : index
    %25 = vector.load %arg8[%c0_18, %c0_19] : memref<32x64xbf16, #tpu.memory_space<vmem>>, vector<32x64xbf16>
    %cst_20 = arith.constant dense<0.000000e+00> : vector<56x64xf32>
    %26 = tpu.matmul %24, %25, %cst_20 {dimension_numbers = #tpu.dot_dimension_numbers<[1], [0], [0], [1], [0, 0, 1, 1], [], []>} : vector<56x32xbf16>, vector<32x64xbf16>, vector<56x64xf32> -> vector<56x64xf32>
    %c0_21 = arith.constant 0 : index
    %c0_22 = arith.constant 0 : index
    %27 = vector.load %arg9[%c0_21, %c0_22] : memref<1x64xf32, #tpu.memory_space<vmem>>, vector<1x64xf32>
    %28 = vector.broadcast %27 : vector<1x64xf32> to vector<56x64xf32>
    %29 = arith.addf %26, %28 : vector<56x64xf32>
    %cst_23 = arith.constant 0.000000e+00 : f32
    %30 = vector.broadcast %cst_23 : f32 to vector<56x64xf32>
    %31 = arith.maximumf %29, %30 : vector<56x64xf32>
    %32 = arith.truncf %31 : vector<56x64xf32> to vector<56x64xbf16>
    %c0_24 = arith.constant 0 : index
    %c0_25 = arith.constant 0 : index
    %33 = vector.load %arg10[%c0_24, %c0_25] : memref<64x256xbf16, #tpu.memory_space<vmem>>, vector<64x256xbf16>
    %cst_26 = arith.constant dense<0.000000e+00> : vector<56x256xf32>
    %34 = tpu.matmul %32, %33, %cst_26 {dimension_numbers = #tpu.dot_dimension_numbers<[1], [0], [0], [1], [0, 0, 1, 1], [], []>} : vector<56x64xbf16>, vector<64x256xbf16>, vector<56x256xf32> -> vector<56x256xf32>
    %c0_27 = arith.constant 0 : index
    %c0_28 = arith.constant 0 : index
    %35 = vector.load %arg11[%c0_27, %c0_28] : memref<1x256xf32, #tpu.memory_space<vmem>>, vector<1x256xf32>
    %36 = vector.broadcast %35 : vector<1x256xf32> to vector<56x256xf32>
    %37 = arith.addf %34, %36 : vector<56x256xf32>
    %cst_29 = arith.constant 0.000000e+00 : f32
    %38 = vector.broadcast %cst_29 : f32 to vector<56x256xf32>
    %39 = arith.maximumf %37, %38 : vector<56x256xf32>
    %40 = arith.truncf %39 : vector<56x256xf32> to vector<56x256xbf16>
    %c0_30 = arith.constant 0 : index
    %c0_31 = arith.constant 0 : index
    %41 = vector.load %arg12[%c0_30, %c0_31] : memref<256x128xbf16, #tpu.memory_space<vmem>>, vector<256x128xbf16>
    %cst_32 = arith.constant dense<0.000000e+00> : vector<56x128xf32>
    %42 = tpu.matmul %40, %41, %cst_32 {dimension_numbers = #tpu.dot_dimension_numbers<[1], [0], [0], [1], [0, 0, 1, 1], [], []>} : vector<56x256xbf16>, vector<256x128xbf16>, vector<56x128xf32> -> vector<56x128xf32>
    %c0_33 = arith.constant 0 : index
    %c0_34 = arith.constant 0 : index
    %43 = vector.load %arg13[%c0_33, %c0_34] : memref<1x128xf32, #tpu.memory_space<vmem>>, vector<1x128xf32>
    %44 = vector.broadcast %43 : vector<1x128xf32> to vector<56x128xf32>
    %45 = arith.addf %42, %44 : vector<56x128xf32>
    %c0_35 = arith.constant 0 : index
    %c0_36 = arith.constant 0 : index
    %46 = vector.load %arg14[%c0_35, %c0_36] : memref<56x128xf32, #tpu.memory_space<vmem>>, vector<56x128xf32>
    tpu.vector_store %arg14[%c0_35, %c0_36], %45 {strides = array<i32>} : memref<56x128xf32, #tpu.memory_space<vmem>>, vector<56x128xf32>,
    return
  }
  func.func @transform_0(%arg0: i32) -> (i32, i32) {
    %c0_i32 = arith.constant 0 : i32
    %c0_i32_0 = arith.constant 0 : i32
    return %arg0, %c0_i32 : i32, i32
  }
  func.func @transform_1(%arg0: i32) -> (i32, i32) {
    %c0_i32 = arith.constant 0 : i32
    %c0_i32_0 = arith.constant 0 : i32
    %c0_i32_1 = arith.constant 0 : i32
    return %c0_i32, %c0_i32_0 : i32, i32
  }
  func.func @transform_2(%arg0: i32) -> (i32, i32) {
    %c0_i32 = arith.constant 0 : i32
    %c0_i32_0 = arith.constant 0 : i32
    %c0_i32_1 = arith.constant 0 : i32
    return %c0_i32, %c0_i32_0 : i32, i32
  }
  func.func @transform_3(%arg0: i32) -> (i32, i32) {
    %c0_i32 = arith.constant 0 : i32
    %c0_i32_0 = arith.constant 0 : i32
    %c0_i32_1 = arith.constant 0 : i32
    return %c0_i32, %c0_i32_0 : i32, i32
  }
  func.func @transform_4(%arg0: i32) -> (i32, i32) {
    %c0_i32 = arith.constant 0 : i32
    %c0_i32_0 = arith.constant 0 : i32
    %c0_i32_1 = arith.constant 0 : i32
    return %c0_i32, %c0_i32_0 : i32, i32
  }
  func.func @transform_5(%arg0: i32) -> (i32, i32) {
    %c0_i32 = arith.constant 0 : i32
    %c0_i32_0 = arith.constant 0 : i32
    %c0_i32_1 = arith.constant 0 : i32
    return %c0_i32, %c0_i32_0 : i32, i32
  }
  func.func @transform_6(%arg0: i32) -> (i32, i32) {
    %c0_i32 = arith.constant 0 : i32
    %c0_i32_0 = arith.constant 0 : i32
    %c0_i32_1 = arith.constant 0 : i32
    return %c0_i32, %c0_i32_0 : i32, i32
  }
  func.func @transform_7(%arg0: i32) -> (i32, i32) {
    %c0_i32 = arith.constant 0 : i32
    %c0_i32_0 = arith.constant 0 : i32
    %c0_i32_1 = arith.constant 0 : i32
    return %c0_i32, %c0_i32_0 : i32, i32
  }
  func.func @transform_8(%arg0: i32) -> (i32, i32) {
    %c0_i32 = arith.constant 0 : i32
    %c0_i32_0 = arith.constant 0 : i32
    %c0_i32_1 = arith.constant 0 : i32
    return %c0_i32, %c0_i32_0 : i32, i32
  }
  func.func @transform_9(%arg0: i32) -> (i32, i32) {
    %c0_i32 = arith.constant 0 : i32
    %c0_i32_0 = arith.constant 0 : i32
    %c0_i32_1 = arith.constant 0 : i32
    return %c0_i32, %c0_i32_0 : i32, i32
  }
  func.func @transform_10(%arg0: i32) -> (i32, i32) {
    %c0_i32 = arith.constant 0 : i32
    %c0_i32_0 = arith.constant 0 : i32
    %c0_i32_1 = arith.constant 0 : i32
    return %c0_i32, %c0_i32_0 : i32, i32
  }
  func.func @transform_11(%arg0: i32) -> (i32, i32) {
    %c0_i32 = arith.constant 0 : i32
    %c0_i32_0 = arith.constant 0 : i32
    %c0_i32_1 = arith.constant 0 : i32
    return %c0_i32, %c0_i32_0 : i32, i32
  }
  func.func @transform_12(%arg0: i32) -> (i32, i32) {
    %c0_i32 = arith.constant 0 : i32
    %c0_i32_0 = arith.constant 0 : i32
    %c0_i32_1 = arith.constant 0 : i32
    return %c0_i32, %c0_i32_0 : i32, i32
  }
  func.func @transform_13(%arg0: i32) -> (i32, i32) {
    %c0_i32 = arith.constant 0 : i32
    %c0_i32_0 = arith.constant 0 : i32
    return %arg0, %c0_i32 : i32, i32
  }
}

</mosaic_0001>

<bundles_post_ra>
// kernel: tpu_custom_call.1
= control target key start
LH: loop header
LB: loop body
LE: loop exit
PB: predicated region body
PF: predicated region fallthrough
CT: control target
= control target key end

     0   :  { %18 = vsyncpa [#allocation3], 0  ;;  %s1990_s0 = inlined_call_operand.hbm [shape: bf16[56,128], index: 0, kind: input, shape index: {}]   ;;  %s1991_s1 = inlined_call_operand.vmem [shape: bf16[128,256], index: 1, kind: input, shape index: {}]   ;;  %s1992_s2 = inlined_call_operand.hbm [shape: f32[1,256], index: 2, kind: input, shape index: {}]   ;;  %s1993_s3 = inlined_call_operand.vmem [shape: bf16[256,64], index: 3, kind: input, shape index: {}]   ;;  %s1994_s4 = inlined_call_operand.hbm [shape: f32[1,64], index: 4, kind: input, shape index: {}]   ;;  %s1995_s5 = inlined_call_operand.vmem [shape: bf16[64,32], index: 5, kind: input, shape index: {}]   ;;  %s1996_s6 = inlined_call_operand.hbm [shape: f32[1,32], index: 6, kind: input, shape index: {}]   ;;  %s1997_s7 = inlined_call_operand.hbm [shape: bf16[32,64], index: 7, kind: input, shape index: {}]   ;;  %s1998_s8 = inlined_call_operand.hbm [shape: f32[1,64], index: 8, kind: input, shape index: {}]   ;;  %s1999_s9 = inlined_call_operand.hbm [shape: bf16[64,256], index: 9, kind: input, shape index: {}]   ;;  %s2000_s10 = inlined_call_operand.vmem [shape: f32[1,256], index: 10, kind: input, shape index: {}]   ;;  %s2001_s11 = inlined_call_operand.vmem [shape: bf16[256,128], index: 11, kind: input, shape index: {}]   ;;  %s2002_s12 = inlined_call_operand.vmem [shape: f32[1,128], index: 12, kind: input, shape index: {}]   ;;  %s2003_s13 = inlined_call_operand.hbm [shape: f32[56,128], index: 13, kind: output, shape index: {}]  }
   0x1   :  { %19 = vsyncpa [#allocation6], 0 }
   0x2   :  { %20 = vsyncpa [#allocation9], 0 }
   0x3   :  { %21 = vsyncpa [#allocation12], 0 }
   0x4   :  { %22 = vsyncpa [#allocation4], 0  ;;  %s1683_s25 = smov [#allocation5]   ;;  %s1684_s27 = smov [#allocation8]  }
   0x5   :  { %s43_s26 = sshll.u32 %s1683_s25, 4  ;;  %s67_s28 = sshll.u32 %s1684_s27, 4  ;;  %s44_s26 = int_to_ptr.vmem [resolvable:$true] %s43_s26  ;;  %s68_s28 = int_to_ptr.vmem [resolvable:$true] %s67_s28 }
   0x6   :  { %s1521_s29 = scalar_lea.vmem %s44_s26, 32  ;;  %p1526_p1 = scmp.lt.s32.totalorder %s44_s26, %s44_s26 }
   0x7   :  { %p1522_p0 = scmp.ne.s32.totalorder %s44_s26, %s1521_s29  ;;  %p1527_p2 = scmp.lt.s32.totalorder %s1521_s29, %s1521_s29 }
   0x9   :  { %p1528_p3 = por %p1527_p2, %p1526_p1 }
   0xb   :  { %p1529_p4 = pnand %p1528_p3, %p1522_p0 }
   0xd   :  { %1532 = shalt.err (!%p1529_p4)
}
   0xe   :  { %46 = dma.hbm_to_vmem [thread:$0]  %s1992_s2, 32, %s44_s26, [#allocation6]  }
   0xf   :  { %s1541_s15 = scalar_lea.vmem %s68_s28, 16  ;;  %s1545_s16 = scalar_lea.vmem %s68_s28, 32 }
  0x10   :  { %p1542_p5 = scmp.ne.s32.totalorder %s68_s28, %s1541_s15  ;;  %p1546_p6 = scmp.lt.s32.totalorder %s68_s28, %s68_s28 }
  0x11   :  { %p1547_p7 = scmp.lt.s32.totalorder %s1545_s16, %s1541_s15 }
  0x13   :  { %p1548_p8 = por %p1547_p7, %p1546_p6 }
  0x15   :  { %p1549_p9 = pnand %p1548_p8, %p1542_p5 }
  0x17   :  { %1552 = shalt.err (!%p1549_p9)
}
  0x18   :  { %70 = dma.hbm_to_vmem [thread:$0]  %s1996_s6, 16, %s68_s28, [#allocation9]  }
  0x19   :  { %s1685_s19 = smov [#allocation11]   ;;  %s1686_s21 = smov [#allocation2]  }
  0x1a   :  { %s89_s20 = sshll.u32 %s1685_s19, 4  ;;  %s28_s22 = sshll.u32 %s1686_s21, 4  ;;  %s90_s20 = int_to_ptr.vmem [resolvable:$true] %s89_s20  ;;  %s29_s22 = int_to_ptr.vmem [resolvable:$true] %s28_s22 }
  0x1b   :  { %s1561_s23 = scalar_lea.vmem %s90_s20, 16  ;;  %s1565_s2 = scalar_lea.vmem %s90_s20, 32 }
  0x1c   :  { %p1562_p10 = scmp.ne.s32.totalorder %s90_s20, %s1561_s23  ;;  %p1566_p11 = scmp.lt.s32.totalorder %s90_s20, %s90_s20 }
  0x1d   :  { %p1567_p12 = scmp.lt.s32.totalorder %s1565_s2, %s1561_s23 }
  0x1f   :  { %p1568_p13 = por %p1567_p12, %p1566_p11 }
  0x21   :  { %p1569_p0 = pnand %p1568_p13, %p1562_p10 }
  0x23   :  { %1572 = shalt.err (!%p1569_p0)
}
  0x24   :  { %92 = dma.hbm_to_vmem [thread:$0]  %s1998_s8, 16, %s90_s20, [#allocation12]  }
  0x25   :  { %s1581_s26 = scalar_lea.vmem %s29_s22, 448  ;;  %p1586_p2 = scmp.lt.s32.totalorder %s29_s22, %s29_s22 }
  0x26   :  { %p1582_p1 = scmp.ne.s32.totalorder %s29_s22, %s1581_s26  ;;  %p1587_p3 = scmp.lt.s32.totalorder %s1581_s26, %s1581_s26 }
  0x28   :  { %p1588_p4 = por %p1587_p3, %p1586_p2 }
  0x2a   :  { %p1589_p5 = pnand %p1588_p4, %p1582_p1 }
  0x2c   :  { %1592 = shalt.err (!%p1589_p5)
}
  0x2d   :  { %s1687_s6 = smov 64   ;;  %s1688_s27 = smov 4  }
  0x2e   :  { %34 = dma.hbm_to_vmem [thread:$0]  %s1990_s0, 448, %s29_s22, [#allocation3], %s1687_s6, %s1687_s6, %s1688_s27  }
  0x2f   :  { %s1689_s30 = smov [#allocation7]   ;;  %s1690_s15 = smov [#allocation10]  }
  0x30   :  { %s55_s14 = sshll.u32 %s1689_s30, 4  ;;  %s76_s16 = sshll.u32 %s1690_s15, 4  ;;  %s56_s14 = int_to_ptr.vmem [resolvable:$true] %s55_s14  ;;  %s77_s16 = int_to_ptr.vmem [resolvable:$true] %s76_s16 }
  0x31   :  { %s1601_s8 = scalar_lea.vmem %s56_s14, 16  ;;  %s1605_s17 = scalar_lea.vmem %s56_s14, 32 }
  0x32   :  { %p1602_p6 = scmp.ne.s32.totalorder %s56_s14, %s1601_s8  ;;  %p1606_p7 = scmp.lt.s32.totalorder %s56_s14, %s56_s14 }
  0x33   :  { %p1607_p8 = scmp.lt.s32.totalorder %s1605_s17, %s1601_s8 }
  0x35   :  { %p1608_p9 = por %p1607_p8, %p1606_p7 }
  0x37   :  { %p1609_p10 = pnand %p1608_p9, %p1602_p6 }
  0x39   :  { %1612 = shalt.err (!%p1609_p10)
}
  0x3a   :  { %58 = dma.hbm_to_vmem [thread:$0]  %s1994_s4, 16, %s56_s14, [#allocation6]  }
  0x3b   :  { %s1621_s20 = scalar_lea.vmem %s77_s16, 256  ;;  %p1626_p12 = scmp.lt.s32.totalorder %s77_s16, %s77_s16 }
  0x3c   :  { %p1622_p11 = scmp.ne.s32.totalorder %s77_s16, %s1621_s20  ;;  %p1627_p13 = scmp.lt.s32.totalorder %s1621_s20, %s1621_s20 }
  0x3e   :  { %p1628_p0 = por %p1627_p13, %p1626_p12 }
  0x40   :  { %p1629_p1 = pnand %p1628_p0, %p1622_p11 }
  0x42   :  { %1632 = shalt.err (!%p1629_p1)
}
  0x43   :  { %82 = dma.hbm_to_vmem [thread:$0]  %s1997_s7, 256, %s77_s16, [#allocation9], %s1687_s6, %s1687_s6, %s1688_s27  }
  0x44   :  { %s1691_s22 = smov [#allocation13]  }
  0x45   :  { %s98_s23 = sshll.u32 %s1691_s22, 4  ;;  %s99_s23 = int_to_ptr.vmem [resolvable:$true] %s98_s23 }
  0x46   :  { %s1641_s2 = scalar_lea.vmem %s99_s23, 1024  ;;  %p1646_p3 = scmp.lt.s32.totalorder %s99_s23, %s99_s23 }
  0x47   :  { %p1642_p2 = scmp.ne.s32.totalorder %s99_s23, %s1641_s2  ;;  %p1647_p4 = scmp.lt.s32.totalorder %s1641_s2, %s1641_s2 }
  0x49   :  { %p1648_p5 = por %p1647_p4, %p1646_p3 }
  0x4b   :  { %p1649_p6 = pnand %p1648_p5, %p1642_p2 }
  0x4d   :  { %1652 = shalt.err (!%p1649_p6)
}
  0x4e   :  { %s1692_s4 = smov 128   ;;  %s1693_s24 = smov 8  }
  0x4f   :  { %104 = dma.hbm_to_vmem [thread:$0]  %s1999_s9, 1024, %s99_s23, [#allocation12], %s1692_s4, %s1692_s4, %s1693_s24  }
  0x50   :  { %1673 = dma.done.wait [#allocation3], 448  }
  0x51   :  { %1674 = vsyncadd [#allocation3], 4294966848 }
  0x52   :  { %1675 = dma.done.wait [#allocation6], 48  }
  0x53   :  { %1676 = vsyncadd [#allocation6], 4294967248 }
  0x54   :  { %1677 = dma.done.wait [#allocation9], 272  }
  0x55   :  { %1678 = vsyncadd [#allocation9], 4294967024 }
  0x56   :  { %1679 = dma.done.wait [#allocation12], 1040  }
  0x57   :  { %1680 = vsyncadd [#allocation12], 4294966256  ;;  %v1694_v0 = vmov 0   ;;  %v1435_v1 = vld [vmem:[%s1991_s1 + $0x74] ss:$8 sps:$4 sm:$0xff]   ;;  %v1467_v17 = vld [vmem:[%s1993_s3 + $0x68] sm:$0xff]   ;;  %v158_v39 = vlaneseq }
  0x58   :  { %302 = vmatprep.mubr.bf16.mxu0 %v1694_v0  ;;  %v1437_v2 = vld [vmem:[%s1991_s1 + $0x70] ss:$8 sps:$4 sm:$0xff]   ;;  %270 = vmatprep.subr.bf16.mxu0 %v1435_v1  ;;  %v1438_v3 = vld [vmem:[%s1991_s1 + $0x64] ss:$8 sps:$4 sm:$0xff]   ;;  %v1440_v4 = vld [vmem:[%s1991_s1 + $0x60] ss:$8 sps:$4 sm:$0xff]  }
  0x59   :  { %271 = vmatpush1.bf16.msra.mxu0 %v1437_v2  ;;  %v1441_v5 = vld [vmem:[%s1991_s1 + $0x54] ss:$8 sps:$4 sm:$0xff]   ;;  %v1443_v6 = vld [vmem:[%s1991_s1 + $0x50] ss:$8 sps:$4 sm:$0xff]   ;;  %v1444_v7 = vld [vmem:[%s1991_s1 + $0x44] ss:$8 sps:$4 sm:$0xff]  }
  0x5a   :  { %272 = vmatprep.subr.bf16.mxu0 %v1438_v3  ;;  %v1446_v8 = vld [vmem:[%s1991_s1 + $0x40] ss:$8 sps:$4 sm:$0xff]   ;;  %v1447_v9 = vld [vmem:[%s1991_s1 + $0x34] ss:$8 sps:$4 sm:$0xff]   ;;  %v1449_v10 = vld [vmem:[%s1991_s1 + $0x30] ss:$8 sps:$4 sm:$0xff]  }
  0x5b   :  { %v1450_v11 = vld [vmem:[%s1991_s1 + $0x24] ss:$8 sps:$4 sm:$0xff]   ;;  %v1463_v12 = vld [vmem:[%s1993_s3 + $0x78] sm:$0xff]   ;;  %v1452_v14 = vld [vmem:[%s1991_s1 + $0x20] ss:$8 sps:$4 sm:$0xff]   ;;  %v1896_v40 = vshrl.u32 %v158_v39, 7 }
  0x5c   :  { %v1464_v13 = vld [vmem:[%s1993_s3 + $0x38] sm:$0xff]   ;;  %1284 = vmatprep.subr.bf16.mxu1 %v1463_v12  ;;  %v1465_v15 = vld [vmem:[%s1993_s3 + $0x70] sm:$0xff]   ;;  %v1468_v20 = vld [vmem:[%s1993_s3 + $0x28] sm:$0xff]   ;;  %vm612_vm0 = vcmask 523264   ;;  %vm723_vm1 = vcmask 261120  }
  0x5d   :  { %273 = vmatpush1.bf16.msra.mxu0 %v1440_v4  ;;  %1285 = vmatpush3.bf16.msra.mxu1 %v1464_v13  ;;  %v1466_v16 = vld [vmem:[%s1993_s3 + $0x30] sm:$0xff]   ;;  %v1469_v21 = vld [vmem:[%s1993_s3 + $0x60] sm:$0xff]   ;;  %v1471_v25 = vld [vmem:[%s1993_s3 + $0x58] sm:$0xff]   ;;  %v164_v41 = vsub.s32 1, %v1896_v40  ;;  %v160_v42 = vsub.s32 0, %v1896_v40 }
  0x5e   :  { %274 = vmatprep.subr.bf16.mxu0 %v1441_v5  ;;  %1286 = vmatprep.subr.bf16.mxu1 %v1465_v15  ;;  %v1453_v18 = vld [vmem:[%s1991_s1 + $0x14] ss:$8 sps:$4 sm:$0xff]   ;;  %v1455_v19 = vld [vmem:[%s1991_s1 + $0x10] ss:$8 sps:$4 sm:$0xff]   ;;  %v1456_v22 = vld [vmem:[%s1991_s1 + $0x4] ss:$8 sps:$4 sm:$0xff]  }
  0x5f   :  { %v1470_v23 = vld [vmem:[%s1993_s3 + $0x20] sm:$0xff]   ;;  %v1472_v27 = vld [vmem:[%s1993_s3 + $0x18] sm:$0xff]   ;;  %v1460_v28 = vld [vmem:[#allocation2 + $0x8] sm:$0xff]  }
  0x60   :  { %v1458_v24 = vld [vmem:[%s1991_s1] ss:$8 sps:$4 sm:$0xff]   ;;  %v1461_v29 = vld [vmem:[#allocation2 + $0x10] sm:$0xff]   ;;  %v1462_v30 = vld [vmem:[#allocation2 + $0x18] ss:$0 sps:$4 sm:$0xff]  }
  0x61   :  { %275 = vmatpush1.bf16.msra.mxu0 %v1443_v6  ;;  %1287 = vmatpush3.bf16.msra.mxu1 %v1466_v16  ;;  %v1459_v26 = vld [vmem:[#allocation2] sm:$0xff]   ;;  %v1473_v31 = vld [vmem:[%s1993_s3 + $0x50] sm:$0xff]   ;;  %v1475_v33 = vld [vmem:[%s1993_s3 + $0x48] sm:$0xff]  }
  0x62   :  { %276 = vmatprep.subr.bf16.mxu0 %v1444_v7  ;;  %1288 = vmatprep.subr.bf16.mxu1 %v1467_v17  ;;  %v1474_v32 = vld [vmem:[%s1993_s3 + $0x10] sm:$0xff]   ;;  %v1476_v34 = vld [vmem:[%s1993_s3 + $0x8] sm:$0xff]   ;;  %v1477_v35 = vld [vmem:[%s1993_s3 + $0x40] sm:$0xff]  }
  0x63   :  { %v1478_v36 = vld [vmem:[%s1993_s3] sm:$0xff]   ;;  %v1479_v37 = vld [vmem:[%s1995_s5 + $0x18] sm:$0xff]   ;;  %v1480_v38 = vld [vmem:[%s1995_s5 + $0x10] sm:$0xff]  }
  0x64   :  { %v156_v43 = vld [vmem:[#allocation5] sm:$0x3] }
  0x65   :  { %277 = vmatpush1.bf16.msra.mxu0 %v1446_v8  ;;  %1289 = vmatpush3.bf16.msra.mxu1 %v1468_v20  ;;  %v165_v45 = vrot.slane %v156_v43, %v164_v41  ;;  %v161_v46 = vrot.slane %v156_v43, %v160_v42 }
  0x66   :  { %278 = vmatprep.subr.bf16.mxu0 %v1447_v9  ;;  %1290 = vmatprep.subr.bf16.mxu1 %v1469_v21 }
  0x69   :  { %279 = vmatpush1.bf16.msra.mxu0 %v1449_v10  ;;  %1291 = vmatpush3.bf16.msra.mxu1 %v1470_v23 }
  0x6a   :  { %280 = vmatprep.subr.bf16.mxu0 %v1450_v11  ;;  %1292 = vmatprep.subr.bf16.mxu1 %v1471_v25 }
  0x6d   :  { %281 = vmatpush1.bf16.msra.mxu0 %v1452_v14  ;;  %1293 = vmatpush3.bf16.msra.mxu1 %v1472_v27 }
  0x6e   :  { %282 = vmatprep.subr.bf16.mxu0 %v1453_v18  ;;  %1294 = vmatprep.subr.bf16.mxu1 %v1473_v31 }
  0x71   :  { %283 = vmatpush1.bf16.msra.mxu0 %v1455_v19  ;;  %1295 = vmatpush3.bf16.msra.mxu1 %v1474_v32 }
  0x72   :  { %284 = vmatprep.subr.bf16.mxu0 %v1456_v22  ;;  %1296 = vmatprep.subr.bf16.mxu1 %v1475_v33 }
  0x75   :  { %285 = vmatpush1.bf16.msra.mxu0 %v1458_v24  ;;  %1297 = vmatpush3.bf16.msra.mxu1 %v1476_v34 }
  0x76   :  { %1298 = vmatprep.subr.bf16.mxu1 %v1477_v35  ;;  %1378 = vmatprep.subr.bf16.mxu0 %v1479_v37  ;;  %v1481_v35 = vld [vmem:[%s1995_s5 + $0x8] sm:$0xff]  }
  0x78   :  { %303 = vmatmul.mubr.bf16.vlgmr.msra.gmra.mxu0 %v1459_v26 }
  0x79   :  { %312 = vmatprep.mubr.bf16.mxu0 %v1694_v0  ;;  %1299 = vmatpush3.bf16.msra.mxu1 %v1478_v36  ;;  %v1482_v36 = vld [vmem:[%s1995_s5] sm:$0xff]  }
  0x7a   :  { %1379 = vmatpush3.bf16.msra.mxu0 %v1479_v37  ;;  %v1483_v37 = vld [vmem:[#allocation10 + $0x8] sm:$0xff]  }
  0x7b   :  { %1380 = vmatprep.subr.bf16.mxu0 %v1480_v38  ;;  %1394 = vmatprep.subr.bf16.mxu1 %v1483_v37 }
  0x7e   :  { %1381 = vmatpush3.bf16.msra.mxu0 %v1480_v38  ;;  %v1484_v38 = vld [vmem:[#allocation10] sm:$0xff]  }
  0x7f   :  { %1382 = vmatprep.subr.bf16.mxu0 %v1481_v35 }
  0x80   :  { %313 = vmatmul.mubr.bf16.gmra.mxu0 %v1460_v28 }
  0x81   :  { %322 = vmatprep.mubr.bf16.mxu0 %v1694_v0 }
  0x82   :  { %1383 = vmatpush3.bf16.msra.mxu0 %v1481_v35 }
  0x83   :  { %1384 = vmatprep.subr.bf16.mxu0 %v1482_v36 }
  0x86   :  { %1385 = vmatpush3.bf16.msra.mxu0 %v1482_v36 }
  0x88   :  { %323 = vmatmul.mubr.bf16.gmra.mxu0 %v1461_v29 }
  0x89   :  { %332 = vmatprep.mubr.bf16.mxu0 %v1694_v0 }
  0x90   :  { %333 = vmatmul.mubr.bf16.gmra.mxu0 %v1462_v30 }
 0x138   :  { %v304_v44 = vpop.f32.mrf.mxu0 }
 0x139   :  { %v305_v51 = vadd.f32 %v304_v44, %v161_v46 }
 0x13a   :  { %v306_v47 = vpop.f32.mrf.mxu0 }
 0x13b   :  { %v307_v49 = vadd.f32 %v306_v47, %v165_v45  ;;  %v341_v58 = vmax.f32 %v305_v51, 0.0 }
 0x13c   :  { %v308_v48 = vpop.f32.mrf.mxu0 }
 0x13d   :  { %v309_v50 = vadd.f32 %v308_v48, %v161_v46  ;;  %v342_v56 = vmax.f32 %v307_v49, 0.0 }
 0x13e   :  { %v310_v52 = vpop.f32.mrf.mxu0 }
 0x13f   :  { %v311_v53 = vadd.f32 %v310_v52, %v165_v45  ;;  %v343_v54 = vmax.f32 %v309_v50, 0.0 }
 0x140   :  { %v314_v55 = vpop.f32.mrf.mxu0 }
 0x141   :  { %v344_v57 = vmax.f32 %v311_v53, 0.0  ;;  %v355_v61 = vpack.c.bf16 %v343_v54, %v341_v58  ;;  %v315_v2 = vadd.f32 %v314_v55, %v161_v46 }
 0x142   :  { %v316_v59 = vpop.f32.mrf.mxu0 }
 0x143   :  { %v356_v60 = vpack.c.bf16 %v344_v57, %v342_v56  ;;  %v317_v63 = vadd.f32 %v316_v59, %v165_v45  ;;  %v345_v9 = vmax.f32 %v315_v2, 0.0 }
 0x144   :  { %v318_v62 = vpop.f32.mrf.mxu0 }
 0x145   :  { %v319_v1 = vadd.f32 %v318_v62, %v161_v46  ;;  %530 = vmatprep.mubr.bf16.mxu1 %v356_v60  ;;  %v346_v7 = vmax.f32 %v317_v63, 0.0 }
 0x146   :  { %v320_v3 = vpop.f32.mrf.mxu0  ;;  %531 = vmatmul.mubr.bf16.vlgmr.msra.gmra.mxu1 %v355_v61 }
 0x147   :  { %v321_v4 = vadd.f32 %v320_v3, %v165_v45  ;;  %v347_v5 = vmax.f32 %v319_v1, 0.0  ;;  %1395 = vmatpush3.bf16.msra.mxu1 %v1483_v37 }
 0x148   :  { %v324_v6 = vpop.f32.mrf.mxu0  ;;  %1396 = vmatprep.subr.bf16.mxu1 %v1484_v38 }
 0x149   :  { %v348_v8 = vmax.f32 %v321_v4, 0.0  ;;  %v357_v12 = vpack.c.bf16 %v347_v5, %v345_v9  ;;  %v325_v13 = vadd.f32 %v324_v6, %v161_v46 }
 0x14a   :  { %v326_v10 = vpop.f32.mrf.mxu0 }
 0x14b   :  { %v358_v11 = vpack.c.bf16 %v348_v8, %v346_v7  ;;  %v327_v15 = vadd.f32 %v326_v10, %v165_v45  ;;  %v349_v19 = vmax.f32 %v325_v13, 0.0  ;;  %1397 = vmatpush3.bf16.msra.mxu1 %v1484_v38 }
 0x14c   :  { %v328_v14 = vpop.f32.mrf.mxu0 }
 0x14d   :  { %v329_v16 = vadd.f32 %v328_v14, %v161_v46  ;;  %538 = vmatprep.mubr.bf16.mxu1 %v358_v11  ;;  %v350_v22 = vmax.f32 %v327_v15, 0.0 }
 0x14e   :  { %v330_v17 = vpop.f32.mrf.mxu0  ;;  %539 = vmatmul.mubr.bf16.gmra.mxu1 %v357_v12 }
 0x14f   :  { %v331_v18 = vadd.f32 %v330_v17, %v165_v45  ;;  %v351_v20 = vmax.f32 %v329_v16, 0.0 }
 0x150   :  { %v334_v21 = vpop.f32.mrf.mxu0 }
 0x151   :  { %v352_v23 = vmax.f32 %v331_v18, 0.0  ;;  %v335_v24 = vadd.f32 %v334_v21, %v161_v46  ;;  %v359_v28 = vpack.c.bf16 %v351_v20, %v349_v19  ;;  %v1485_v21 = vld [vmem:[#allocation13 + $0x30] ss:$8 sps:$4 sm:$0xff]  }
 0x152   :  { %v336_v25 = vpop.f32.mrf.mxu0 }
 0x153   :  { %v360_v26 = vpack.c.bf16 %v352_v23, %v350_v22  ;;  %v337_v27 = vadd.f32 %v336_v25, %v165_v45  ;;  %v353_v31 = vmax.f32 %v335_v24, 0.0  ;;  %v1222_v45 = vld [vmem:[#allocation7] ss:$0 sm:$0xff]  ;;  %v1487_v22 = vld [vmem:[#allocation13 + $0x34] ss:$8 sps:$4 sm:$0xff]  }
 0x154   :  { %v338_v29 = vpop.f32.mrf.mxu0  ;;  %891 = vmatprep.subr.bf16.mxu0 %v1487_v22  ;;  %v1239_v25 = vld [vmem:[#allocation8] ss:$0 sm:$0xff] }
 0x155   :  { %v354_v30 = vmax.f32 %v337_v27, 0.0  ;;  %546 = vmatprep.mubr.bf16.mxu1 %v360_v26  ;;  %v361_v34 = vpack.c.bf16 %v353_v31, %v353_v31 }
 0x156   :  { %547 = vmatmul.mubr.bf16.gmra.mxu1 %v359_v28  ;;  %v339_v32 = vpop.f32.mrf.mxu0 }
 0x157   :  { %v362_v33 = vpack.c.bf16 %v354_v30, %v354_v30 }
 0x159   :  { %554 = vmatprep.mubr.bf16.mxu1 %v362_v33 }
 0x15e   :  { %555 = vmatmul.mubr.bf16.gmra.mxu1 %v361_v34 }
 0x206   :  { %v1300_v39 = vpop.f32.mrf.mxu1 }
 0x208   :  { %v1301_v43 = vpop.f32.mrf.mxu1 }
 0x209   :  { %v1302_v44 = vadd.f32 %v1301_v43, %v1300_v39 }
 0x20a   :  { %v1303_v46 = vpop.f32.mrf.mxu1 }
 0x20b   :  { %v533_v48 = vadd.f32 %v1302_v44, %v1222_v45 }
 0x20c   :  { %v1304_v47 = vpop.f32.mrf.mxu1 }
 0x20d   :  { %v1305_v49 = vadd.f32 %v1304_v47, %v1303_v46  ;;  %v562_v53 = vmax.f32 %v533_v48, 0.0 }
 0x20e   :  { %v1306_v50 = vpop.f32.mrf.mxu1 }
 0x20f   :  { %v536_v51 = vadd.f32 %v1305_v49, %v1222_v45 }
 0x210   :  { %v1307_v52 = vpop.f32.mrf.mxu1 }
 0x211   :  { %v563_v54 = vmax.f32 %v536_v51, 0.0  ;;  %v1308_v55 = vadd.f32 %v1307_v52, %v1306_v50 }
 0x212   :  { %v1309_v56 = vpop.f32.mrf.mxu1 }
 0x213   :  { %v569_v57 = vpack.c.bf16 %v563_v54, %v562_v53  ;;  %v541_v59 = vadd.f32 %v1308_v55, %v1222_v45  ;;  %v1490_v53 = vld [vmem:[#allocation13 + $0x24] ss:$8 sps:$4 sm:$0xff]   ;;  %v1488_v54 = vld [vmem:[#allocation13 + $0x20] ss:$8 sps:$4 sm:$0xff]   ;;  %v1493_v55 = vld [vmem:[#allocation13 + $0x14] ss:$8 sps:$4 sm:$0xff]  }
 0x214   :  { %v1310_v58 = vpop.f32.mrf.mxu1 }
 0x215   :  { %v1311_v60 = vadd.f32 %v1310_v58, %v1309_v56  ;;  %1386 = vmatprep.mubr.msk.bf16.mxu0 %vm612_vm0, %v569_v57  ;;  %v564_v1 = vmax.f32 %v541_v59, 0.0  ;;  %v1491_v56 = vld [vmem:[#allocation13 + $0x10] ss:$8 sps:$4 sm:$0xff]   ;;  %v1496_v57 = vld [vmem:[#allocation13 + $0x4] ss:$8 sps:$4 sm:$0xff]  }
 0x216   :  { %v1312_v61 = vpop.f32.mrf.mxu1  ;;  %v1494_v58 = vld [vmem:[#allocation13] ss:$8 sps:$4 sm:$0xff]  }
 0x217   :  { %v544_v62 = vadd.f32 %v1311_v60, %v1222_v45  ;;  %v1497_v59 = vld [vmem:[%s2001_s11 + $0x78] sm:$0xff]  }
 0x218   :  { %v1313_v63 = vpop.f32.mrf.mxu1  ;;  %v1498_v60 = vld [vmem:[%s2001_s11 + $0x38] sm:$0xff]   ;;  %1406 = vmatprep.subr.bf16.mxu1 %v1497_v59 }
 0x219   :  { %v565_v2 = vmax.f32 %v544_v62, 0.0  ;;  %v1314_v3 = vadd.f32 %v1313_v63, %v1312_v61  ;;  %v1499_v61 = vld [vmem:[%s2001_s11 + $0x70] sm:$0xff]   ;;  %v1501_v63 = vld [vmem:[%s2001_s11 + $0x68] sm:$0xff]  }
 0x21a   :  { %v1315_v4 = vpop.f32.mrf.mxu1  ;;  %v1500_v62 = vld [vmem:[%s2001_s11 + $0x30] sm:$0xff]  }
 0x21b   :  { %v570_v5 = vpack.c.bf16 %v565_v2, %v564_v1  ;;  %v549_v7 = vadd.f32 %v1314_v3, %v1222_v45  ;;  %v1502_v1 = vld [vmem:[%s2001_s11 + $0x28] sm:$0xff]   ;;  %v1503_v2 = vld [vmem:[%s2001_s11 + $0x60] sm:$0xff]  }
 0x21c   :  { %v1316_v6 = vpop.f32.mrf.mxu1  ;;  %v1504_v3 = vld [vmem:[%s2001_s11 + $0x20] sm:$0xff]  }
 0x21d   :  { %v1317_v8 = vadd.f32 %v1316_v6, %v1315_v4  ;;  %1387 = vmatmul.mubr.msk.bf16.vlgmr.msra.gmra.mxu0 %vm612_vm0, %v570_v5  ;;  %v566_v12 = vmax.f32 %v549_v7, 0.0  ;;  %v1505_v4 = vld [vmem:[%s2001_s11 + $0x58] sm:$0xff]  }
 0x21e   :  { %v1318_v9 = vpop.f32.mrf.mxu1  ;;  %892 = vmatpush1.bf16.msra.mxu0 %v1485_v21  ;;  %v1506_v5 = vld [vmem:[%s2001_s11 + $0x18] sm:$0xff]  }
 0x21f   :  { %v552_v10 = vadd.f32 %v1317_v8, %v1222_v45  ;;  %893 = vmatprep.subr.bf16.mxu0 %v1490_v53  ;;  %v1248_v8 = vld [vmem:[#allocation11] ss:$0 sm:$0xff] }
 0x220   :  { %v1319_v11 = vpop.f32.mrf.mxu1 }
 0x221   :  { %v567_v13 = vmax.f32 %v552_v10, 0.0  ;;  %v1320_v14 = vadd.f32 %v1319_v11, %v1318_v9 }
 0x222   :  { %v1321_v15 = vpop.f32.mrf.mxu1  ;;  %894 = vmatpush1.bf16.msra.mxu0 %v1488_v54 }
 0x223   :  { %v571_v16 = vpack.c.bf16 %v567_v13, %v566_v12  ;;  %v557_v17 = vadd.f32 %v1320_v14, %v1222_v45  ;;  %895 = vmatprep.subr.bf16.mxu0 %v1493_v55 }
 0x224   :  { %v1322_v18 = vpop.f32.mrf.mxu1 }
 0x225   :  { %v568_v19 = vmax.f32 %v557_v17, 0.0  ;;  %1390 = vmatprep.mubr.msk.bf16.mxu0 %vm612_vm0, %v571_v16 }
 0x226   :  { %896 = vmatpush1.bf16.msra.mxu0 %v1491_v56 }
 0x227   :  { %v572_v20 = vpack.c.bf16 %v568_v19, %v568_v19  ;;  %897 = vmatprep.subr.bf16.mxu0 %v1496_v57 }
 0x229   :  { %1391 = vmatmul.mubr.msk.bf16.gmra.mxu0 %vm612_vm0, %v572_v20 }
 0x22a   :  { %915 = vmatprep.mubr.bf16.mxu0 %v1694_v0  ;;  %898 = vmatpush1.bf16.msra.mxu0 %v1494_v58 }
 0x22b   :  { %1338 = vmatprep.subr.bf16.mxu0 %v1497_v59 }
 0x2dd   :  { %v1388_v23 = vpop.f32.mrf.mxu0 }
 0x2de   :  { %v668_v29 = vadd.f32 %v1388_v23, %v1239_v25 }
 0x2df   :  { %v659_v24 = vpop.f32.mrf.mxu0 }
 0x2e0   :  { %v660_v27 = vadd.f32 %v1239_v25, %v659_v24  ;;  %v691_v35 = vmax.f32 %v668_v29, 0.0 }
 0x2e1   :  { %v1389_v26 = vpop.f32.mrf.mxu0 }
 0x2e2   :  { %v671_v28 = vadd.f32 %v1389_v26, %v1239_v25  ;;  %v689_v33 = vmax.f32 %v660_v27, 0.0 }
 0x2e3   :  { %v662_v30 = vpop.f32.mrf.mxu0 }
 0x2e4   :  { %v663_v31 = vadd.f32 %v1239_v25, %v662_v30  ;;  %v692_v32 = vmax.f32 %v671_v28, 0.0 }
 0x2e6   :  { %v690_v34 = vmax.f32 %v663_v31, 0.0  ;;  %v697_v37 = vpack.c.bf16 %v692_v32, %v691_v35  ;;  %v1510_v35 = vld [vmem:[%s2001_s11 + $0x8] sm:$0xff]  }
 0x2e8   :  { %v696_v36 = vpack.c.bf16 %v690_v34, %v689_v33  ;;  %v1507_v33 = vld [vmem:[%s2001_s11 + $0x50] sm:$0xff]  }
 0x2e9   :  { %v1392_v38 = vpop.f32.mrf.mxu0  ;;  %v1508_v34 = vld [vmem:[%s2001_s11 + $0x10] sm:$0xff]  }
 0x2ea   :  { %1398 = vmatprep.mubr.msk.bf16.mxu1 %vm723_vm1, %v696_v36  ;;  %v684_v43 = vadd.f32 %v1392_v38, %v1239_v25  ;;  %v1511_v36 = vld [vmem:[%s2001_s11 + $0x40] sm:$0xff]  }
 0x2eb   :  { %v675_v39 = vpop.f32.mrf.mxu0  ;;  %1399 = vmatmul.mubr.msk.bf16.vlgmr.msra.gmra.mxu1 %vm723_vm1, %v697_v37  ;;  %v1512_v37 = vld [vmem:[%s2001_s11] sm:$0xff]  }
 0x2ec   :  { %v676_v45 = vadd.f32 %v1239_v25, %v675_v39  ;;  %v695_v48 = vmax.f32 %v684_v43, 0.0  ;;  %1414 = vmatpush3.bf16.msra.mxu1 %v1498_v60  ;;  %v819_v38 = vld [vmem:[%s2000_s10] sm:$0x3] }
 0x2ed   :  { %v1393_v44 = vpop.f32.mrf.mxu0  ;;  %1407 = vmatprep.subr.bf16.mxu1 %v1499_v61  ;;  %v828_v43 = vrot.slane %v819_v38, %v164_v41 }
 0x2ee   :  { %v693_v49 = vmax.f32 %v676_v45, 0.0  ;;  %v699_v52 = vpack.c.bf16 %v695_v48, %v695_v48  ;;  %v824_v44 = vrot.slane %v819_v38, %v160_v42 }
 0x2ef   :  { %v678_v46 = vpop.f32.mrf.mxu0 }
 0x2f0   :  { %v679_v47 = vadd.f32 %v1239_v25, %v678_v46  ;;  %1415 = vmatpush3.bf16.msra.mxu1 %v1500_v62 }
 0x2f1   :  { %1408 = vmatprep.subr.bf16.mxu1 %v1501_v63 }
 0x2f2   :  { %v694_v50 = vmax.f32 %v679_v47, 0.0 }
 0x2f4   :  { %v698_v51 = vpack.c.bf16 %v694_v50, %v693_v49  ;;  %1416 = vmatpush3.bf16.msra.mxu1 %v1502_v1 }
 0x2f5   :  { %1409 = vmatprep.subr.bf16.mxu1 %v1503_v2 }
 0x2f6   :  { %1402 = vmatprep.mubr.msk.bf16.mxu1 %vm723_vm1, %v698_v51 }
 0x2f7   :  { %1403 = vmatmul.mubr.msk.bf16.gmra.mxu1 %vm723_vm1, %v699_v52 }
 0x2f8   :  { %1417 = vmatpush3.bf16.msra.mxu1 %v1504_v3 }
 0x2f9   :  { %1410 = vmatprep.subr.bf16.mxu1 %v1505_v4 }
 0x2fc   :  { %1418 = vmatpush3.bf16.msra.mxu1 %v1506_v5 }
 0x2fd   :  { %1411 = vmatprep.subr.bf16.mxu1 %v1507_v33 }
 0x300   :  { %1419 = vmatpush3.bf16.msra.mxu1 %v1508_v34 }
 0x3ab   :  { %v1400_v6 = vpop.f32.mrf.mxu1 }
 0x3ac   :  { %v779_v18 = vadd.f32 %v1400_v6, %v1248_v8 }
 0x3ad   :  { %v770_v7 = vpop.f32.mrf.mxu1 }
 0x3ae   :  { %v771_v10 = vadd.f32 %v1248_v8, %v770_v7  ;;  %v802_v22 = vmax.f32 %v779_v18, 0.0 }
 0x3af   :  { %v1401_v9 = vpop.f32.mrf.mxu1 }
 0x3b0   :  { %v800_v13 = vmax.f32 %v771_v10, 0.0  ;;  %v782_v15 = vadd.f32 %v1401_v9, %v1248_v8 }
 0x3b1   :  { %v773_v11 = vpop.f32.mrf.mxu1 }
 0x3b2   :  { %v774_v12 = vadd.f32 %v1248_v8, %v773_v11  ;;  %v803_v20 = vmax.f32 %v782_v15, 0.0 }
 0x3b4   :  { %v801_v14 = vmax.f32 %v774_v12, 0.0  ;;  %v808_v24 = vpack.c.bf16 %v803_v20, %v802_v22 }
 0x3b6   :  { %v807_v16 = vpack.c.bf16 %v801_v14, %v800_v13 }
 0x3b7   :  { %v1404_v17 = vpop.f32.mrf.mxu1 }
 0x3b8   :  { %1263 = vmatmul.mubr.msk.bf16.vlgmr.msra.gmra.mxu0 %vm612_vm0, %v807_v16  ;;  %v795_v29 = vadd.f32 %v1404_v17, %v1248_v8 }
 0x3b9   :  { %v786_v19 = vpop.f32.mrf.mxu1  ;;  %925 = vmatprep.mubr.bf16.mxu0 %v1694_v0  ;;  %1339 = vmatpush3.bf16.msra.mxu0 %v1498_v60 }
 0x3ba   :  { %1340 = vmatprep.subr.bf16.mxu0 %v1499_v61  ;;  %v787_v26 = vadd.f32 %v1248_v8, %v786_v19  ;;  %v806_v31 = vmax.f32 %v795_v29, 0.0 }
 0x3bb   :  { %v1405_v21 = vpop.f32.mrf.mxu1 }
 0x3bc   :  { %v804_v28 = vmax.f32 %v787_v26, 0.0  ;;  %v810_v32 = vpack.c.bf16 %v806_v31, %v806_v31  ;;  %v1267_v31 = vld [vmem:[%s2002_s12] ss:$0 sm:$0xff]  ;;  %s1695_s12 = smov [#allocation14]  }
 0x3bd   :  { %v789_v23 = vpop.f32.mrf.mxu1  ;;  %1341 = vmatpush3.bf16.msra.mxu0 %v1500_v62  ;;  %s1187_s17 = sshll.u32 %s1695_s12, 4  ;;  %s1188_s17 = int_to_ptr.vmem [resolvable:$true] %s1187_s17 }
 0x3be   :  { %v790_v25 = vadd.f32 %v1248_v8, %v789_v23  ;;  %1342 = vmatprep.subr.bf16.mxu0 %v1501_v63  ;;  %s1653_s18 = scalar_lea.vmem %s1188_s17, 896  ;;  %p1658_p8 = scmp.lt.s32.totalorder %s1188_s17, %s1188_s17 }
 0x3bf   :  { %p1654_p7 = scmp.ne.s32.totalorder %s1188_s17, %s1653_s18  ;;  %p1659_p9 = scmp.lt.s32.totalorder %s1653_s18, %s1653_s18 }
 0x3c0   :  { %1264 = vmatmul.mubr.msk.bf16.gmra.mxu0 %vm612_vm0, %v808_v24  ;;  %v805_v27 = vmax.f32 %v790_v25, 0.0 }
 0x3c1   :  { %935 = vmatprep.mubr.bf16.mxu0 %v1694_v0  ;;  %1343 = vmatpush3.bf16.msra.mxu0 %v1502_v1  ;;  %p1660_p10 = por %p1659_p9, %p1658_p8 }
 0x3c2   :  { %1344 = vmatprep.subr.bf16.mxu0 %v1503_v2  ;;  %v809_v30 = vpack.c.bf16 %v805_v27, %v804_v28 }
 0x3c3   :  { %p1661_p11 = pnand %p1660_p10, %p1654_p7 }
 0x3c5   :  { %1345 = vmatpush3.bf16.msra.mxu0 %v1504_v3 }
 0x3c6   :  { %1346 = vmatprep.subr.bf16.mxu0 %v1505_v4 }
 0x3c8   :  { %1265 = vmatmul.mubr.msk.bf16.gmra.mxu0 %vm612_vm0, %v809_v30 }
 0x3c9   :  { %945 = vmatprep.mubr.bf16.mxu0 %v1694_v0  ;;  %1347 = vmatpush3.bf16.msra.mxu0 %v1506_v5  ;;  %v1509_v0 = vld [vmem:[%s2001_s11 + $0x48] sm:$0xff]  }
 0x3ca   :  { %1348 = vmatprep.subr.bf16.mxu0 %v1507_v33  ;;  %1412 = vmatprep.subr.bf16.mxu1 %v1509_v0 }
 0x3cb   :  { %1420 = vmatpush3.bf16.msra.mxu1 %v1510_v35 }
 0x3cc   :  { %1413 = vmatprep.subr.bf16.mxu1 %v1511_v36 }
 0x3cd   :  { %1349 = vmatpush3.bf16.msra.mxu0 %v1508_v34 }
 0x3ce   :  { %1350 = vmatprep.subr.bf16.mxu0 %v1509_v0 }
 0x3cf   :  { %1421 = vmatpush3.bf16.msra.mxu1 %v1512_v37 }
 0x3d0   :  { %1266 = vmatmul.mubr.msk.bf16.gmra.mxu0 %vm612_vm0, %v810_v32 }
 0x3d1   :  { %1351 = vmatpush3.bf16.msra.mxu0 %v1510_v35 }
 0x3d2   :  { %1352 = vmatprep.subr.bf16.mxu0 %v1511_v36 }
 0x3d5   :  { %1353 = vmatpush3.bf16.msra.mxu0 %v1512_v37 }
 0x478   :  { %v917_v39 = vpop.f32.mrf.mxu0 }
 0x479   :  { %v918_v49 = vadd.f32 %v917_v39, %v824_v44 }
 0x47a   :  { %v919_v45 = vpop.f32.mrf.mxu0 }
 0x47b   :  { %v920_v47 = vadd.f32 %v919_v45, %v828_v43  ;;  %v954_v56 = vmax.f32 %v918_v49, 0.0 }
 0x47c   :  { %v921_v46 = vpop.f32.mrf.mxu0 }
 0x47d   :  { %v922_v48 = vadd.f32 %v921_v46, %v824_v44  ;;  %v955_v54 = vmax.f32 %v920_v47, 0.0 }
 0x47e   :  { %v923_v50 = vpop.f32.mrf.mxu0 }
 0x47f   :  { %v924_v51 = vadd.f32 %v923_v50, %v828_v43  ;;  %v956_v52 = vmax.f32 %v922_v48, 0.0 }
 0x480   :  { %v927_v53 = vpop.f32.mrf.mxu0 }
 0x481   :  { %v957_v55 = vmax.f32 %v924_v51, 0.0  ;;  %v968_v59 = vpack.c.bf16 %v956_v52, %v954_v56  ;;  %v928_v40 = vadd.f32 %v927_v53, %v824_v44 }
 0x482   :  { %v929_v57 = vpop.f32.mrf.mxu0 }
 0x483   :  { %v969_v58 = vpack.c.bf16 %v957_v55, %v955_v54  ;;  %v930_v41 = vadd.f32 %v929_v57, %v828_v43  ;;  %v958_v4 = vmax.f32 %v928_v40, 0.0 }
 0x484   :  { %v931_v60 = vpop.f32.mrf.mxu0 }
 0x485   :  { %v932_v61 = vadd.f32 %v931_v60, %v824_v44  ;;  %1143 = vmatprep.mubr.bf16.mxu0 %v969_v58  ;;  %v959_v2 = vmax.f32 %v930_v41, 0.0 }
 0x486   :  { %v933_v42 = vpop.f32.mrf.mxu0  ;;  %1144 = vmatmul.mubr.bf16.vlgmr.msra.gmra.mxu0 %v968_v59 }
 0x487   :  { %v934_v62 = vadd.f32 %v933_v42, %v828_v43  ;;  %v960_v63 = vmax.f32 %v932_v61, 0.0 }
 0x488   :  { %v937_v1 = vpop.f32.mrf.mxu0 }
 0x489   :  { %v961_v3 = vmax.f32 %v934_v62, 0.0  ;;  %v970_v7 = vpack.c.bf16 %v960_v63, %v958_v4  ;;  %v938_v11 = vadd.f32 %v937_v1, %v824_v44 }
 0x48a   :  { %v939_v5 = vpop.f32.mrf.mxu0 }
 0x48b   :  { %v971_v6 = vpack.c.bf16 %v961_v3, %v959_v2  ;;  %v940_v9 = vadd.f32 %v939_v5, %v828_v43  ;;  %v962_v18 = vmax.f32 %v938_v11, 0.0 }
 0x48c   :  { %v941_v8 = vpop.f32.mrf.mxu0 }
 0x48d   :  { %v942_v10 = vadd.f32 %v941_v8, %v824_v44  ;;  %1151 = vmatprep.mubr.bf16.mxu1 %v971_v6  ;;  %v963_v16 = vmax.f32 %v940_v9, 0.0 }
 0x48e   :  { %v943_v12 = vpop.f32.mrf.mxu0  ;;  %1152 = vmatmul.mubr.bf16.vlgmr.msra.gmra.mxu1 %v970_v7 }
 0x48f   :  { %v944_v13 = vadd.f32 %v943_v12, %v828_v43  ;;  %v964_v14 = vmax.f32 %v942_v10, 0.0 }
 0x490   :  { %v947_v15 = vpop.f32.mrf.mxu0 }
 0x491   :  { %v965_v17 = vmax.f32 %v944_v13, 0.0  ;;  %v972_v22 = vpack.c.bf16 %v964_v14, %v962_v18  ;;  %v948_v23 = vadd.f32 %v947_v15, %v824_v44 }
 0x492   :  { %v949_v19 = vpop.f32.mrf.mxu0 }
 0x493   :  { %v973_v20 = vpack.c.bf16 %v965_v17, %v963_v16  ;;  %v950_v21 = vadd.f32 %v949_v19, %v828_v43  ;;  %v966_v28 = vmax.f32 %v948_v23, 0.0 }
 0x494   :  { %v951_v24 = vpop.f32.mrf.mxu0 }
 0x495   :  { %v967_v25 = vmax.f32 %v950_v21, 0.0  ;;  %1159 = vmatprep.mubr.bf16.mxu1 %v973_v20  ;;  %v974_v29 = vpack.c.bf16 %v966_v28, %v966_v28 }
 0x496   :  { %v952_v26 = vpop.f32.mrf.mxu0  ;;  %1160 = vmatmul.mubr.bf16.gmra.mxu1 %v972_v22 }
 0x497   :  { %v975_v27 = vpack.c.bf16 %v967_v25, %v967_v25 }
 0x499   :  { %1167 = vmatprep.mubr.bf16.mxu1 %v975_v27 }
 0x49e   :  { %1168 = vmatmul.mubr.bf16.gmra.mxu1 %v974_v29 }
 0x546   :  { %v1354_v30 = vpop.f32.mrf.mxu0 }
 0x548   :  { %v1355_v32 = vpop.f32.mrf.mxu0 }
 0x549   :  { %v1356_v33 = vadd.f32 %v1355_v32, %v1354_v30 }
 0x54a   :  { %v1357_v34 = vpop.f32.mrf.mxu0 }
 0x54b   :  { %v1146_v0 = vadd.f32 %v1356_v33, %v1267_v31 }
 0x54c   :  { %v1358_v35 = vpop.f32.mrf.mxu0 }
 0x54d   :  { %1175 = vst [vmem:[#allocation14] sm:$0xff] %v1146_v0  ;;  %v1359_v36 = vadd.f32 %v1358_v35, %v1357_v34 }
 0x54e   :  { %v1360_v37 = vpop.f32.mrf.mxu1 }
 0x54f   :  { %v1149_v38 = vadd.f32 %v1359_v36, %v1267_v31 }
 0x550   :  { %v1361_v39 = vpop.f32.mrf.mxu1 }
 0x551   :  { %1176 = vst [vmem:[#allocation14 + $0x8] sm:$0xff] %v1149_v38  ;;  %v1362_v43 = vadd.f32 %v1361_v39, %v1360_v37 }
 0x552   :  { %v1363_v44 = vpop.f32.mrf.mxu1 }
 0x553   :  { %v1154_v45 = vadd.f32 %v1362_v43, %v1267_v31 }
 0x554   :  { %v1364_v46 = vpop.f32.mrf.mxu1 }
 0x555   :  { %1177 = vst [vmem:[#allocation14 + $0x10] sm:$0xff] %v1154_v45  ;;  %v1365_v47 = vadd.f32 %v1364_v46, %v1363_v44 }
 0x556   :  { %v1366_v48 = vpop.f32.mrf.mxu1 }
 0x557   :  { %v1157_v49 = vadd.f32 %v1365_v47, %v1267_v31 }
 0x558   :  { %v1367_v50 = vpop.f32.mrf.mxu1 }
 0x559   :  { %1178 = vst [vmem:[#allocation14 + $0x18] sm:$0xff] %v1157_v49  ;;  %v1368_v51 = vadd.f32 %v1367_v50, %v1366_v48 }
 0x55a   :  { %v1369_v52 = vpop.f32.mrf.mxu1 }
 0x55b   :  { %v1162_v53 = vadd.f32 %v1368_v51, %v1267_v31 }
 0x55c   :  { %v1370_v54 = vpop.f32.mrf.mxu1 }
 0x55d   :  { %1179 = vst [vmem:[#allocation14 + $0x20] sm:$0xff] %v1162_v53  ;;  %v1371_v55 = vadd.f32 %v1370_v54, %v1369_v52 }
 0x55e   :  { %v1372_v56 = vpop.f32.mrf.mxu1 }
 0x55f   :  { %v1165_v57 = vadd.f32 %v1371_v55, %v1267_v31 }
 0x560   :  { %v1373_v58 = vpop.f32.mrf.mxu1 }
 0x561   :  { %1180 = vst [vmem:[#allocation14 + $0x28] sm:$0xff] %v1165_v57  ;;  %v1374_v59 = vadd.f32 %v1373_v58, %v1372_v56 }
 0x562   :  { %v1375_v60 = vpop.f32.mrf.mxu1 }
 0x563   :  { %v1170_v41 = vadd.f32 %v1374_v59, %v1267_v31 }
 0x564   :  { %v1376_v61 = vpop.f32.mrf.mxu1 }
 0x565   :  { %1181 = vst [vmem:[#allocation14 + $0x30] sm:$0xff] %v1170_v41 }
 0x566   :  { %1664 = shalt.err (!%p1661_p11)
}
 0x567   :  { %1193 = dma.vmem_to_hbm [thread:$0]  %s1188_s17, 896, %s2003_s13, [#allocation4], %s1692_s4, %s1692_s4, %s1693_s24  }
 0x568   :  { %1681 = dma.done.wait [#allocation4], 896  }
 0x569   :  { %1682 = vsyncadd [#allocation4], 4294966400 }
 0x56a   :  { %1197 = vsyncpa [#allocation3], 1 }
 0x56b   :  { %1198 = vsyncpa [#allocation6], 1 }
 0x56c   :  { %1199 = vsyncpa [#allocation9], 1 }
 0x56d   :  { %1200 = vsyncpa [#allocation12], 1 }
 0x56e   :  { %1201 = vsyncpa [#allocation4], 1 }

</bundles_post_ra>
